<compile_context>
chip_gen: v6e
topology: v6e:2x2x1
jax: 0.10.0
libtpu: 0.0.40
codegen_flags: <defaults>
</compile_context>

<pallas_src>
import numpy as np
import jax
import jax.numpy as jnp
from jax.experimental import pallas as pl
from jax.experimental.pallas import tpu as pltpu

# ----------------------------------------------------------------------------
# Model configuration (small, deterministic, consistent with the module ctor)
# ----------------------------------------------------------------------------
SIZES = dict(ph=8, ws=12, ss=10, phh1=16, wsh1=16, wsh2=20,
             ssh1=16, ssh2=20, ssh3=12, task=6)
BATCH = 2

# layer name -> (input segments, output segment)  [mirrors the torch module]
LAYERS = {
    "to_phh1": (["ph", "ph", "phh1"], "phh1"),   # cat(iph, prev_oph, prev_phh1)
    "to_wsh1": (["ph", "wsh2"], "wsh1"),         # cat(iph, prev_wsh2)
    "to_wsh2": (["wsh1", "ws", "ssh1"], "wsh2"), # cat(wsh1, iws, prev_ssh1)
    "to_ows":  (["wsh2", "task"], "ws"),         # cat(wsh2, itn)
    "to_ssh1": (["wsh2", "ssh2"], "ssh1"),       # cat(wsh2, prev_ssh2)
    "to_ssh2": (["ssh1", "ss", "ssh3"], "ssh2"), # cat(ssh1, iss, prev_ssh3)
    "to_oss":  (["ssh2", "task"], "ss"),         # cat(ssh2, itn)
    "to_ssh3": (["ssh2", "ph"], "ssh3"),         # cat(ssh2, prev_oph)
    "to_oph":  (["ssh3", "phh1", "task"], "ph"), # cat(ssh3, phh1, itn)
}


def _round_up(x, m):
    return ((x + m - 1) // m) * m


# ---- packed lane layouts -----------------------------------------------------
# External (per-timestep) inputs slab: iph | iws | iss | itn | const-1 lane.
EXT_ORDER = ["iph", "iws", "iss", "itn", "one"]
EXT_SIZE = {"iph": SIZES["ph"], "iws": SIZES["ws"], "iss": SIZES["ss"],
            "itn": SIZES["task"], "one": 1}
EXT_OFF = {}
_o = 0
for _n in EXT_ORDER:
    EXT_OFF[_n] = _o
    _o += EXT_SIZE[_n]
EXT_W = _round_up(_o, 128)          # 128

# State / output / pre-activation slab (layout chosen so no segment crosses a
# 128-lane vreg boundary).
ST_ORDER = ["oph", "ows", "oss", "phh1", "wsh1", "wsh2", "ssh1", "ssh2", "ssh3"]
ST_SIZE = {"oph": SIZES["ph"], "ows": SIZES["ws"], "oss": SIZES["ss"],
           "phh1": SIZES["phh1"], "wsh1": SIZES["wsh1"], "wsh2": SIZES["wsh2"],
           "ssh1": SIZES["ssh1"], "ssh2": SIZES["ssh2"], "ssh3": SIZES["ssh3"]}
ST_OFF = {}
_o = 0
for _n in ST_ORDER:
    _w = ST_SIZE[_n]
    if _o // 128 != (_o + _w - 1) // 128:      # would cross a lane-128 boundary
        _o = _round_up(_o, 128)
    ST_OFF[_n] = _o
    _o += _w
ST_W = _round_up(_o, 128)           # 256

# Fresh (within-timestep) weight slab, (32, 128):
#   A1: wsh1 -> wsh2 | A2: wsh2 -> [ows|ssh1] | A3: ssh1 -> ssh2
#   A4: ssh2 -> [oss|ssh3] | A5: ssh3 -> oph | A6: phh1 -> oph
A1 = 0
A2 = A1 + SIZES["wsh2"]
A3 = A2 + SIZES["ws"] + SIZES["ssh1"]
A4 = A3 + SIZES["ssh2"]
A5 = A4 + SIZES["ss"] + SIZES["ssh3"]
A6 = A5 + SIZES["ph"]
FR_W = 128
FR_ROWS = 32


# ----------------------------------------------------------------------------
# Parameter init (mimics weights_init(): W ~ U(-1, 1), bias = -1)
# ----------------------------------------------------------------------------
def init_params(key):
    params = {}
    for name, (ins, out) in LAYERS.items():
        key, sub = jax.random.split(key)
        in_total = sum(SIZES[s] for s in ins)
        w = jax.random.uniform(sub, (in_total, SIZES[out]),
                               dtype=jnp.float32, minval=-1.0, maxval=1.0)
        b = jnp.full((SIZES[out],), -1.0, dtype=jnp.float32)
        params[name] = (w, b)
    return params


def _row_chunks(w, sizes):
    out, off = [], 0
    for n in sizes:
        out.append(np.asarray(w[off:off + n, :]))
        off += n
    return out


# ----------------------------------------------------------------------------
# Host-side weight packing (task string -> mask_semantics routing)
# ----------------------------------------------------------------------------
def pack_weights(params, task):
    iws_from_ext = ("production" in task) and ("word" in task)
    iss_from_ext = ("production" in task) and ("word" not in task)

    S = SIZES
    w_ext = np.zeros((EXT_W, ST_W), np.float32)
    w_st = np.zeros((ST_W, ST_W), np.float32)
    w_fr = np.zeros((FR_ROWS, FR_W), np.float32)

    def cols(out_name):
        return ST_OFF[out_name], ST_OFF[out_name] + ST_SIZE[out_name]

    def put_ext(src, seg, c):
        r = EXT_OFF[seg]
        w_ext[r:r + src.shape[0], c[0]:c[1]] = src

    def put_st(src, seg, c):
        r = ST_OFF[seg]
        w_st[r:r + src.shape[0], c[0]:c[1]] = src

    def put_bias(b, c):
        w_ext[EXT_OFF["one"], c[0]:c[1]] = np.asarray(b)   # bias via const-1 lane

    # to_phh1: cat(iph, prev_oph, prev_phh1)
    w, b = params["to_phh1"]
    a1, a2, a3 = _row_chunks(w, [S["ph"], S["ph"], S["phh1"]])
    c = cols("phh1")
    put_ext(a1, "iph", c); put_st(a2, "oph", c); put_st(a3, "phh1", c); put_bias(b, c)

    # to_wsh1: cat(iph, prev_wsh2)
    w, b = params["to_wsh1"]
    a1, a2 = _row_chunks(w, [S["ph"], S["wsh2"]])
    c = cols("wsh1")
    put_ext(a1, "iph", c); put_st(a2, "wsh2", c); put_bias(b, c)

    # to_wsh2: cat(wsh1, iws_eff, prev_ssh1)
    w, b = params["to_wsh2"]
    a1, a2, a3 = _row_chunks(w, [S["wsh1"], S["ws"], S["ssh1"]])
    c = cols("wsh2")
    w_fr[0:S["wsh1"], A1:A1 + S["wsh2"]] = a1
    if iws_from_ext:
        put_ext(a2, "iws", c)
    else:
        put_st(a2, "ows", c)             # iws_eff = prev_ows
    put_st(a3, "ssh1", c); put_bias(b, c)

    # to_ows: cat(wsh2, itn)
    w, b = params["to_ows"]
    a1, a2 = _row_chunks(w, [S["wsh2"], S["task"]])
    c = cols("ows")
    w_fr[0:S["wsh2"], A2:A2 + S["ws"]] = a1
    put_ext(a2, "itn", c); put_bias(b, c)

    # to_ssh1: cat(wsh2, prev_ssh2)
    w, b = params["to_ssh1"]
    a1, a2 = _row_chunks(w, [S["wsh2"], S["ssh2"]])
    c = cols("ssh1")
    w_fr[0:S["wsh2"], A2 + S["ws"]:A2 + S["ws"] + S["ssh1"]] = a1
    put_st(a2, "ssh2", c); put_bias(b, c)

    # to_ssh2: cat(ssh1, iss_eff, prev_ssh3)
    w, b = params["to_ssh2"]
    a1, a2, a3 = _row_chunks(w, [S["ssh1"], S["ss"], S["ssh3"]])
    c = cols("ssh2")
    w_fr[0:S["ssh1"], A3:A3 + S["ssh2"]] = a1
    if iss_from_ext:
        put_ext(a2, "iss", c)
    else:
        put_st(a2, "oss", c)             # iss_eff = prev_oss
    put_st(a3, "ssh3", c); put_bias(b, c)

    # to_oss: cat(ssh2, itn)
    w, b = params["to_oss"]
    a1, a2 = _row_chunks(w, [S["ssh2"], S["task"]])
    c = cols("oss")
    w_fr[0:S["ssh2"], A4:A4 + S["ss"]] = a1
    put_ext(a2, "itn", c); put_bias(b, c)

    # to_ssh3: cat(ssh2, prev_oph)
    w, b = params["to_ssh3"]
    a1, a2 = _row_chunks(w, [S["ssh2"], S["ph"]])
    c = cols("ssh3")
    w_fr[0:S["ssh2"], A4 + S["ss"]:A4 + S["ss"] + S["ssh3"]] = a1
    put_st(a2, "oph", c); put_bias(b, c)

    # to_oph: cat(ssh3, phh1, itn)
    w, b = params["to_oph"]
    a1, a2, a3 = _row_chunks(w, [S["ssh3"], S["phh1"], S["task"]])
    c = cols("oph")
    w_fr[0:S["ssh3"], A5:A5 + S["ph"]] = a1
    w_fr[0:S["phh1"], A6:A6 + S["ph"]] = a2
    put_ext(a3, "itn", c); put_bias(b, c)

    return jnp.asarray(w_ext), jnp.asarray(w_st), jnp.asarray(w_fr)


# ----------------------------------------------------------------------------
# Pallas kernel: one recurrence step per grid iteration, state held in VMEM
# ----------------------------------------------------------------------------
def _lichtheim_step_kernel(ext_ref, init_ref, wext_ref, wst_ref, wf_ref,
                           out_ref, state):
    t = pl.program_id(0)

    @pl.when(t == 0)
    def _():
        state[...] = init_ref[...]           # load the t=-1 activations once

    ext = ext_ref[0]                          # (PADB, 128) inputs (+ const-1 lane)
    st = state[...]                           # (PADB, 256) previous-step state

    # External + recurrent contributions (and biases) of ALL 9 layers at once.
    pre = (jnp.dot(ext, wext_ref[...], preferred_element_type=jnp.float32) +
           jnp.dot(st, wst_ref[...], preferred_element_type=jnp.float32))

    wf = wf_ref[...]                          # (32, 128) within-step couplings
    sig = jax.nn.sigmoid
    rows = ext.shape[0]
    S = SIZES

    def p(name):
        o = ST_OFF[name]
        return pre[:, o:o + ST_SIZE[name]]

    def mm(x, w):
        return jnp.dot(x, w, preferred_element_type=jnp.float32)

    # 6-stage dependency chain (7 MXU pushes total, incl. the two big ones).
    phh1 = sig(p("phh1"))
    wsh1 = sig(p("wsh1"))
    wsh2 = sig(p("wsh2") + mm(wsh1, wf[0:S["wsh1"], A1:A1 + S["wsh2"]]))
    t2 = mm(wsh2, wf[0:S["wsh2"], A2:A2 + S["ws"] + S["ssh1"]])
    ows = sig(p("ows") + t2[:, 0:S["ws"]])
    ssh1 = sig(p("ssh1") + t2[:, S["ws"]:S["ws"] + S["ssh1"]])
    ssh2 = sig(p("ssh2") + mm(ssh1, wf[0:S["ssh1"], A3:A3 + S["ssh2"]]))
    t4 = mm(ssh2, wf[0:S["ssh2"], A4:A4 + S["ss"] + S["ssh3"]])
    oss = sig(p("oss") + t4[:, 0:S["ss"]])
    ssh3 = sig(p("ssh3") + t4[:, S["ss"]:S["ss"] + S["ssh3"]])
    logits = (p("oph") + mm(ssh3, wf[0:S["ssh3"], A5:A5 + S["ph"]])
              + mm(phh1, wf[0:S["phh1"], A6:A6 + S["ph"]]))
    oph = jax.nn.softmax(logits, axis=-1)     # Softmax over the feature dim

    # Assemble the new lane-dense state/output slab.
    vals = {"oph": oph, "ows": ows, "oss": oss, "phh1": phh1, "wsh1": wsh1,
            "wsh2": wsh2, "ssh1": ssh1, "ssh2": ssh2, "ssh3": ssh3}
    parts, cursor = [], 0
    for name in ST_ORDER:
        off = ST_OFF[name]
        if off > cursor:
            parts.append(jnp.zeros((rows, off - cursor), jnp.float32))
        parts.append(vals[name])
        cursor = off + ST_SIZE[name]
    if cursor < ST_W:
        parts.append(jnp.zeros((rows, ST_W - cursor), jnp.float32))
    new_state = jnp.concatenate(parts, axis=-1)

    state[...] = new_state                    # carry to the next timestep
    out_ref[0] = new_state                    # one lane-dense (8,256) writeback


# ----------------------------------------------------------------------------
# Wrappers
# ----------------------------------------------------------------------------
def lichtheim_rollout(params, iph, iws, iss, itn, prev0, task, ignore_itn=True):
    """Run T timesteps of the LichtheimMemory forward pass in ONE pallas_call.

    iph/iws/iss/itn: (T, B, size) per-step external inputs.
    prev0: dict of (B, size) arrays = the t=-1 activations.
    Returns a dict of (T, B, size) trajectories of the 9 computed activations.
    """
    T, B = iph.shape[0], iph.shape[1]
    padb = _round_up(B, 8)

    if ignore_itn:
        itn = jnp.zeros_like(itn)

    # Pack per-step external inputs into a lane-dense (T, padb, 128) slab.
    ext = jnp.zeros((T, padb, EXT_W), jnp.float32)
    for name, arr in (("iph", iph), ("iws", iws), ("iss", iss), ("itn", itn)):
        o = EXT_OFF[name]
        ext = ext.at[:, :B, o:o + arr.shape[-1]].set(arr.astype(jnp.float32))
    ext = ext.at[:, :, EXT_OFF["one"]].set(1.0)   # constant-1 lane (folded bias)

    # Pack the t=-1 state.
    init = jnp.zeros((padb, ST_W), jnp.float32)
    for name in ST_ORDER:
        o = ST_OFF[name]
        init = init.at[:B, o:o + ST_SIZE[name]].set(
            prev0[name].astype(jnp.float32))

    w_ext, w_st, w_fr = pack_weights(params, task)

    grid_spec = pltpu.PrefetchScalarGridSpec(
        num_scalar_prefetch=0,
        grid=(T,),
        in_specs=[
            pl.BlockSpec((1, padb, EXT_W), lambda t: (t, 0, 0)),  # per-step inputs
            pl.BlockSpec((padb, ST_W), lambda t: (0, 0)),         # t=-1 state
            pl.BlockSpec((EXT_W, ST_W), lambda t: (0, 0)),        # resident weights
            pl.BlockSpec((ST_W, ST_W), lambda t: (0, 0)),
            pl.BlockSpec((FR_ROWS, FR_W), lambda t: (0, 0)),
        ],
        out_specs=pl.BlockSpec((1, padb, ST_W), lambda t: (t, 0, 0)),
        scratch_shapes=[pltpu.VMEM((padb, ST_W), jnp.float32)],
    )

    out = pl.pallas_call(
        _lichtheim_step_kernel,
        grid_spec=grid_spec,
        out_shape=jax.ShapeDtypeStruct((T, padb, ST_W), jnp.float32),
        compiler_params=pltpu.CompilerParams(
            dimension_semantics=("arbitrary",)),   # serial recurrence
    )(ext, init, w_ext, w_st, w_fr)

    return {name: out[:, :B, ST_OFF[name]:ST_OFF[name] + ST_SIZE[name]]
            for name in ST_ORDER}


def lichtheim_forward(params, iph, iws, iss, itn, prev, task, ignore_itn=True):
    """Single-timestep forward returning the same dict as the torch module."""
    itn_eff = jnp.zeros_like(itn) if ignore_itn else itn
    if "production" in task:
        if "word" in task:
            iws_eff, iss_eff = iws, prev["oss"]
        else:
            iws_eff, iss_eff = prev["ows"], iss
    else:
        iws_eff, iss_eff = prev["ows"], prev["oss"]

    traj = lichtheim_rollout(params, iph[None], iws[None], iss[None],
                             itn[None], prev, task, ignore_itn=ignore_itn)
    acts = {name: traj[name][0] for name in ST_ORDER}
    acts.update({"iph": iph, "iws": iws_eff, "iss": iss_eff, "itn": itn_eff})
    return acts


# ----------------------------------------------------------------------------
# Pure-JAX reference (mirrors the PyTorch forward exactly) for validation
# ----------------------------------------------------------------------------
def lichtheim_reference_step(params, iph, iws, iss, itn, prev, task,
                             ignore_itn=True):
    if ignore_itn:
        itn = jnp.zeros_like(itn)
    if "production" in task:
        if "word" in task:
            iws_eff, iss_eff = iws, prev["oss"]
        else:
            iws_eff, iss_eff = prev["ows"], iss
    else:
        iws_eff, iss_eff = prev["ows"], prev["oss"]

    def lin(name, xs):
        w, b = params[name]
        return jnp.concatenate(xs, axis=1) @ w + b

    sig = jax.nn.sigmoid
    phh1 = sig(lin("to_phh1", [iph, prev["oph"], prev["phh1"]]))
    wsh1 = sig(lin("to_wsh1", [iph, prev["wsh2"]]))
    wsh2 = sig(lin("to_wsh2", [wsh1, iws_eff, prev["ssh1"]]))
    ows = sig(lin("to_ows", [wsh2, itn]))
    ssh1 = sig(lin("to_ssh1", [wsh2, prev["ssh2"]]))
    ssh2 = sig(lin("to_ssh2", [ssh1, iss_eff, prev["ssh3"]]))
    oss = sig(lin("to_oss", [ssh2, itn]))
    ssh3 = sig(lin("to_ssh3", [ssh2, prev["oph"]]))
    oph = jax.nn.softmax(lin("to_oph", [ssh3, phh1, itn]), axis=1)
    return {"oph": oph, "ows": ows, "oss": oss, "phh1": phh1, "wsh1": wsh1,
            "wsh2": wsh2, "ssh1": ssh1, "ssh2": ssh2, "ssh3": ssh3}


# ----------------------------------------------------------------------------
if __name__ == "__main__":
    T = 6
    key = jax.random.PRNGKey(0)
    params = init_params(jax.random.PRNGKey(42))

    k_iph, k_iws, k_iss, k_itn = jax.random.split(key, 4)
    iph = jax.random.uniform(k_iph, (T, BATCH, SIZES["ph"]), jnp.float32)
    iws = jax.random.uniform(k_iws, (T, BATCH, SIZES["ws"]), jnp.float32)
    iss = jax.random.uniform(k_iss, (T, BATCH, SIZES["ss"]), jnp.float32)
    itn = jax.random.uniform(k_itn, (T, BATCH, SIZES["task"]), jnp.float32)

    # t=-1 previous-state inputs (matches _get_t0_prev_inputs defaults)
    prev0 = {"oph": jnp.zeros((BATCH, SIZES["ph"]), jnp.float32)}
    for _n in ["ows", "oss", "phh1", "wsh1", "wsh2", "ssh1", "ssh2", "ssh3"]:
        prev0[_n] = jnp.full((BATCH, ST_SIZE[_n]), 0.5, jnp.float32)

    tasks = ["word production", "sentence production", "repetition"]
    for task in tasks:
        traj = lichtheim_rollout(params, iph, iws, iss, itn, prev0, task)
        traj = jax.tree_util.tree_map(jax.block_until_ready, traj)

        # Reference: Python loop over the pure-JAX single-step forward.
        prev = dict(prev0)
        for t in range(T):
            ref = lichtheim_reference_step(params, iph[t], iws[t], iss[t],
                                           itn[t], prev, task)
            for name in ST_ORDER:
                np.testing.assert_allclose(
                    np.asarray(traj[name][t]), np.asarray(ref[name]),
                    rtol=1e-4, atol=1e-4, err_msg=f"{task}/{name}/t={t}")
            prev = ref

        if task == tasks[0]:
            # Single-step (module-equivalent) wrapper must match step 0.
            acts = lichtheim_forward(params, iph[0], iws[0], iss[0], itn[0],
                                     prev0, task)
            jax.block_until_ready(acts["oph"])
            for name in ST_ORDER:
                np.testing.assert_allclose(
                    np.asarray(acts[name]), np.asarray(traj[name][0]),
                    rtol=1e-5, atol=1e-5, err_msg=f"single-step/{name}")

    print("KERNEL_OK")
</pallas_src>

<mosaic_0001>
module attributes {stable_mosaic.version = 11 : i64} {
  func.func @_lichtheim_step_kernel(%arg0: i32, %arg1: memref<1x8x128xf32, #tpu.memory_space<vmem>>, %arg2: memref<8x256xf32, #tpu.memory_space<vmem>>, %arg3: memref<128x256xf32, #tpu.memory_space<vmem>>, %arg4: memref<256x256xf32, #tpu.memory_space<vmem>>, %arg5: memref<32x128xf32, #tpu.memory_space<vmem>>, %arg6: memref<1x8x256xf32, #tpu.memory_space<vmem>>, %arg7: memref<8x256xf32, #tpu.memory_space<vmem>>) attributes {dimension_semantics = [#tpu.dimension_semantics<arbitrary>], iteration_bounds = array<i64: 6>, scalar_prefetch = 0 : i64, scratch_operands = 1 : i64, tpu.core_type = #tpu.core_type<tc>, window_params = [{transform_indices = @transform_0, window_bounds = array<i64: 1, 8, 128>}, {pipeline_mode = #tpu.pipeline_mode<synchronous>, transform_indices = @transform_1, window_bounds = array<i64: 8, 256>}, {pipeline_mode = #tpu.pipeline_mode<synchronous>, transform_indices = @transform_2, window_bounds = array<i64: 128, 256>}, {pipeline_mode = #tpu.pipeline_mode<synchronous>, transform_indices = @transform_3, window_bounds = array<i64: 256, 256>}, {pipeline_mode = #tpu.pipeline_mode<synchronous>, transform_indices = @transform_4, window_bounds = array<i64: 32, 128>}, {transform_indices = @transform_5, window_bounds = array<i64: 1, 8, 256>}]} {
    %c0_i32 = arith.constant 0 : i32
    %0 = arith.cmpi eq, %arg0, %c0_i32 : i32
    %1 = arith.extui %0 : i1 to i32
    %c0_i32_0 = arith.constant 0 : i32
    %2 = arith.cmpi ne, %1, %c0_i32_0 : i32
    scf.if %2 {
      %c0_36 = arith.constant 0 : index
      %c0_37 = arith.constant 0 : index
      %103 = vector.load %arg2[%c0_36, %c0_37] : memref<8x256xf32, #tpu.memory_space<vmem>>, vector<8x256xf32>
      %c0_38 = arith.constant 0 : index
      %c0_39 = arith.constant 0 : index
      %104 = vector.load %arg7[%c0_38, %c0_39] : memref<8x256xf32, #tpu.memory_space<vmem>>, vector<8x256xf32>
      tpu.vector_store %arg7[%c0_38, %c0_39], %103 {strides = array<i32>} : memref<8x256xf32, #tpu.memory_space<vmem>>, vector<8x256xf32>,
    } else {
    }
    %c0 = arith.constant 0 : index
    %c0_1 = arith.constant 0 : index
    %c0_2 = arith.constant 0 : index
    %3 = vector.load %arg1[%c0, %c0_1, %c0_2] : memref<1x8x128xf32, #tpu.memory_space<vmem>>, vector<1x8x128xf32>
    %4 = vector.shape_cast %3 : vector<1x8x128xf32> to vector<8x128xf32>
    %c0_3 = arith.constant 0 : index
    %c0_4 = arith.constant 0 : index
    %5 = vector.load %arg7[%c0_3, %c0_4] : memref<8x256xf32, #tpu.memory_space<vmem>>, vector<8x256xf32>
    %c0_5 = arith.constant 0 : index
    %c0_6 = arith.constant 0 : index
    %6 = vector.load %arg3[%c0_5, %c0_6] : memref<128x256xf32, #tpu.memory_space<vmem>>, vector<128x256xf32>
    %cst = arith.constant dense<0.000000e+00> : vector<8x256xf32>
    %7 = tpu.matmul %4, %6, %cst {dimension_numbers = #tpu.dot_dimension_numbers<[1], [0], [0], [1], [0, 0, 1, 1], [], []>} : vector<8x128xf32>, vector<128x256xf32>, vector<8x256xf32> -> vector<8x256xf32>
    %c0_7 = arith.constant 0 : index
    %c0_8 = arith.constant 0 : index
    %8 = vector.load %arg4[%c0_7, %c0_8] : memref<256x256xf32, #tpu.memory_space<vmem>>, vector<256x256xf32>
    %cst_9 = arith.constant dense<0.000000e+00> : vector<8x256xf32>
    %9 = tpu.matmul %5, %8, %cst_9 {dimension_numbers = #tpu.dot_dimension_numbers<[1], [0], [0], [1], [0, 0, 1, 1], [], []>} : vector<8x256xf32>, vector<256x256xf32>, vector<8x256xf32> -> vector<8x256xf32>
    %10 = arith.addf %7, %9 : vector<8x256xf32>
    %c0_10 = arith.constant 0 : index
    %c0_11 = arith.constant 0 : index
    %11 = vector.load %arg5[%c0_10, %c0_11] : memref<32x128xf32, #tpu.memory_space<vmem>>, vector<32x128xf32>
    %12 = vector.extract_strided_slice %10 {offsets = [0, 30], sizes = [8, 16], strides = [1, 1]} : vector<8x256xf32> to vector<8x16xf32>
    %13 = arith.negf %12 : vector<8x16xf32>
    %14 = math.exp %13 : vector<8x16xf32>
    %cst_12 = arith.constant 1.000000e+00 : f32
    %15 = vector.broadcast %cst_12 : f32 to vector<8x16xf32>
    %16 = arith.addf %15, %14 : vector<8x16xf32>
    %17 = arith.divf %15, %16 : vector<8x16xf32>
    %18 = vector.extract_strided_slice %10 {offsets = [0, 46], sizes = [8, 16], strides = [1, 1]} : vector<8x256xf32> to vector<8x16xf32>
    %19 = arith.negf %18 : vector<8x16xf32>
    %20 = math.exp %19 : vector<8x16xf32>
    %cst_13 = arith.constant 1.000000e+00 : f32
    %21 = vector.broadcast %cst_13 : f32 to vector<8x16xf32>
    %22 = arith.addf %21, %20 : vector<8x16xf32>
    %23 = arith.divf %21, %22 : vector<8x16xf32>
    %24 = vector.extract_strided_slice %10 {offsets = [0, 62], sizes = [8, 20], strides = [1, 1]} : vector<8x256xf32> to vector<8x20xf32>
    %25 = vector.extract_strided_slice %11 {offsets = [0, 0], sizes = [16, 20], strides = [1, 1]} : vector<32x128xf32> to vector<16x20xf32>
    %cst_14 = arith.constant dense<0.000000e+00> : vector<8x20xf32>
    %26 = tpu.matmul %23, %25, %cst_14 {dimension_numbers = #tpu.dot_dimension_numbers<[1], [0], [0], [1], [0, 0, 1, 1], [], []>} : vector<8x16xf32>, vector<16x20xf32>, vector<8x20xf32> -> vector<8x20xf32>
    %27 = arith.addf %24, %26 : vector<8x20xf32>
    %28 = arith.negf %27 : vector<8x20xf32>
    %29 = math.exp %28 : vector<8x20xf32>
    %cst_15 = arith.constant 1.000000e+00 : f32
    %30 = vector.broadcast %cst_15 : f32 to vector<8x20xf32>
    %31 = arith.addf %30, %29 : vector<8x20xf32>
    %32 = arith.divf %30, %31 : vector<8x20xf32>
    %33 = vector.extract_strided_slice %11 {offsets = [0, 20], sizes = [20, 28], strides = [1, 1]} : vector<32x128xf32> to vector<20x28xf32>
    %cst_16 = arith.constant dense<0.000000e+00> : vector<8x28xf32>
    %34 = tpu.matmul %32, %33, %cst_16 {dimension_numbers = #tpu.dot_dimension_numbers<[1], [0], [0], [1], [0, 0, 1, 1], [], []>} : vector<8x20xf32>, vector<20x28xf32>, vector<8x28xf32> -> vector<8x28xf32>
    %35 = vector.extract_strided_slice %10 {offsets = [0, 8], sizes = [8, 12], strides = [1, 1]} : vector<8x256xf32> to vector<8x12xf32>
    %36 = vector.extract_strided_slice %34 {offsets = [0, 0], sizes = [8, 12], strides = [1, 1]} : vector<8x28xf32> to vector<8x12xf32>
    %37 = arith.addf %35, %36 : vector<8x12xf32>
    %38 = arith.negf %37 : vector<8x12xf32>
    %39 = math.exp %38 : vector<8x12xf32>
    %cst_17 = arith.constant 1.000000e+00 : f32
    %40 = vector.broadcast %cst_17 : f32 to vector<8x12xf32>
    %41 = arith.addf %40, %39 : vector<8x12xf32>
    %42 = arith.divf %40, %41 : vector<8x12xf32>
    %43 = vector.extract_strided_slice %10 {offsets = [0, 82], sizes = [8, 16], strides = [1, 1]} : vector<8x256xf32> to vector<8x16xf32>
    %44 = vector.extract_strided_slice %34 {offsets = [0, 12], sizes = [8, 16], strides = [1, 1]} : vector<8x28xf32> to vector<8x16xf32>
    %45 = arith.addf %43, %44 : vector<8x16xf32>
    %46 = arith.negf %45 : vector<8x16xf32>
    %47 = math.exp %46 : vector<8x16xf32>
    %cst_18 = arith.constant 1.000000e+00 : f32
    %48 = vector.broadcast %cst_18 : f32 to vector<8x16xf32>
    %49 = arith.addf %48, %47 : vector<8x16xf32>
    %50 = arith.divf %48, %49 : vector<8x16xf32>
    %51 = vector.extract_strided_slice %10 {offsets = [0, 98], sizes = [8, 20], strides = [1, 1]} : vector<8x256xf32> to vector<8x20xf32>
    %52 = vector.extract_strided_slice %11 {offsets = [0, 48], sizes = [16, 20], strides = [1, 1]} : vector<32x128xf32> to vector<16x20xf32>
    %cst_19 = arith.constant dense<0.000000e+00> : vector<8x20xf32>
    %53 = tpu.matmul %50, %52, %cst_19 {dimension_numbers = #tpu.dot_dimension_numbers<[1], [0], [0], [1], [0, 0, 1, 1], [], []>} : vector<8x16xf32>, vector<16x20xf32>, vector<8x20xf32> -> vector<8x20xf32>
    %54 = arith.addf %51, %53 : vector<8x20xf32>
    %55 = arith.negf %54 : vector<8x20xf32>
    %56 = math.exp %55 : vector<8x20xf32>
    %cst_20 = arith.constant 1.000000e+00 : f32
    %57 = vector.broadcast %cst_20 : f32 to vector<8x20xf32>
    %58 = arith.addf %57, %56 : vector<8x20xf32>
    %59 = arith.divf %57, %58 : vector<8x20xf32>
    %60 = vector.extract_strided_slice %11 {offsets = [0, 68], sizes = [20, 22], strides = [1, 1]} : vector<32x128xf32> to vector<20x22xf32>
    %cst_21 = arith.constant dense<0.000000e+00> : vector<8x22xf32>
    %61 = tpu.matmul %59, %60, %cst_21 {dimension_numbers = #tpu.dot_dimension_numbers<[1], [0], [0], [1], [0, 0, 1, 1], [], []>} : vector<8x20xf32>, vector<20x22xf32>, vector<8x22xf32> -> vector<8x22xf32>
    %62 = vector.extract_strided_slice %10 {offsets = [0, 20], sizes = [8, 10], strides = [1, 1]} : vector<8x256xf32> to vector<8x10xf32>
    %63 = vector.extract_strided_slice %61 {offsets = [0, 0], sizes = [8, 10], strides = [1, 1]} : vector<8x22xf32> to vector<8x10xf32>
    %64 = arith.addf %62, %63 : vector<8x10xf32>
    %65 = arith.negf %64 : vector<8x10xf32>
    %66 = math.exp %65 : vector<8x10xf32>
    %cst_22 = arith.constant 1.000000e+00 : f32
    %67 = vector.broadcast %cst_22 : f32 to vector<8x10xf32>
    %68 = arith.addf %67, %66 : vector<8x10xf32>
    %69 = arith.divf %67, %68 : vector<8x10xf32>
    %70 = vector.extract_strided_slice %10 {offsets = [0, 128], sizes = [8, 12], strides = [1, 1]} : vector<8x256xf32> to vector<8x12xf32>
    %71 = vector.extract_strided_slice %61 {offsets = [0, 10], sizes = [8, 12], strides = [1, 1]} : vector<8x22xf32> to vector<8x12xf32>
    %72 = arith.addf %70, %71 : vector<8x12xf32>
    %73 = arith.negf %72 : vector<8x12xf32>
    %74 = math.exp %73 : vector<8x12xf32>
    %cst_23 = arith.constant 1.000000e+00 : f32
    %75 = vector.broadcast %cst_23 : f32 to vector<8x12xf32>
    %76 = arith.addf %75, %74 : vector<8x12xf32>
    %77 = arith.divf %75, %76 : vector<8x12xf32>
    %78 = vector.extract_strided_slice %10 {offsets = [0, 0], sizes = [8, 8], strides = [1, 1]} : vector<8x256xf32> to vector<8x8xf32>
    %79 = vector.extract_strided_slice %11 {offsets = [0, 90], sizes = [12, 8], strides = [1, 1]} : vector<32x128xf32> to vector<12x8xf32>
    %cst_24 = arith.constant dense<0.000000e+00> : vector<8x8xf32>
    %80 = tpu.matmul %77, %79, %cst_24 {dimension_numbers = #tpu.dot_dimension_numbers<[1], [0], [0], [1], [0, 0, 1, 1], [], []>} : vector<8x12xf32>, vector<12x8xf32>, vector<8x8xf32> -> vector<8x8xf32>
    %81 = arith.addf %78, %80 : vector<8x8xf32>
    %82 = vector.extract_strided_slice %11 {offsets = [0, 98], sizes = [16, 8], strides = [1, 1]} : vector<32x128xf32> to vector<16x8xf32>
    %cst_25 = arith.constant dense<0.000000e+00> : vector<8x8xf32>
    %83 = tpu.matmul %17, %82, %cst_25 {dimension_numbers = #tpu.dot_dimension_numbers<[1], [0], [0], [1], [0, 0, 1, 1], [], []>} : vector<8x16xf32>, vector<16x8xf32>, vector<8x8xf32> -> vector<8x8xf32>
    %84 = arith.addf %81, %83 : vector<8x8xf32>
    %cst_26 = arith.constant dense<0xFF800000> : vector<8xf32>
    %85 = vector.multi_reduction <maximumf>, %84, %cst_26 [1] : vector<8x8xf32> to vector<8xf32>
    %cst_27 = arith.constant 0xFF800000 : f32
    %86 = vector.broadcast %cst_27 : f32 to vector<8xf32>
    %87 = arith.maximumf %86, %85 : vector<8xf32>
    %88 = vector.shape_cast %87 : vector<8xf32> to vector<8x1xf32>
    %89 = vector.broadcast %88 : vector<8x1xf32> to vector<8x8xf32>
    %90 = arith.subf %84, %89 : vector<8x8xf32>
    %91 = math.exp %90 : vector<8x8xf32>
    %cst_28 = arith.constant dense<0.000000e+00> : vector<8xf32>
    %92 = vector.multi_reduction <add>, %91, %cst_28 [1] : vector<8x8xf32> to vector<8xf32>
    %93 = vector.shape_cast %92 : vector<8xf32> to vector<8x1xf32>
    %94 = vector.broadcast %93 : vector<8x1xf32> to vector<8x8xf32>
    %95 = arith.divf %91, %94 : vector<8x8xf32>
    %cst_29 = arith.constant 0.000000e+00 : f32
    %96 = vector.broadcast %cst_29 : f32 to vector<8x10xf32>
    %cst_30 = arith.constant 0.000000e+00 : f32
    %97 = vector.broadcast %cst_30 : f32 to vector<8x116xf32>
    %98 = tpu.concatenate %95, %42, %69, %17, %23, %32, %50, %59, %96, %77, %97 in 1 : vector<8x8xf32>, vector<8x12xf32>, vector<8x10xf32>, vector<8x16xf32>, vector<8x16xf32>, vector<8x20xf32>, vector<8x16xf32>, vector<8x20xf32>, vector<8x10xf32>, vector<8x12xf32>, vector<8x116xf32> -> vector<8x256xf32>
    %c0_31 = arith.constant 0 : index
    %c0_32 = arith.constant 0 : index
    %99 = vector.load %arg7[%c0_31, %c0_32] : memref<8x256xf32, #tpu.memory_space<vmem>>, vector<8x256xf32>
    tpu.vector_store %arg7[%c0_31, %c0_32], %98 {strides = array<i32>} : memref<8x256xf32, #tpu.memory_space<vmem>>, vector<8x256xf32>,
    %c0_33 = arith.constant 0 : index
    %c0_34 = arith.constant 0 : index
    %c0_35 = arith.constant 0 : index
    %100 = vector.load %arg6[%c0_33, %c0_34, %c0_35] : memref<1x8x256xf32, #tpu.memory_space<vmem>>, vector<1x8x256xf32>
    %101 = vector.shape_cast %100 : vector<1x8x256xf32> to vector<8x256xf32>
    %102 = vector.shape_cast %98 : vector<8x256xf32> to vector<1x8x256xf32>
    tpu.vector_store %arg6[%c0_33, %c0_34, %c0_35], %102 {strides = array<i32>} : memref<1x8x256xf32, #tpu.memory_space<vmem>>, vector<1x8x256xf32>,
    return
  }
  func.func @transform_0(%arg0: i32) -> (i32, i32, i32) {
    %c0_i32 = arith.constant 0 : i32
    %c0_i32_0 = arith.constant 0 : i32
    %c0_i32_1 = arith.constant 0 : i32
    return %arg0, %c0_i32, %c0_i32_0 : i32, i32, i32
  }
  func.func @transform_1(%arg0: i32) -> (i32, i32) {
    %c0_i32 = arith.constant 0 : i32
    %c0_i32_0 = arith.constant 0 : i32
    %c0_i32_1 = arith.constant 0 : i32
    return %c0_i32, %c0_i32_0 : i32, i32
  }
  func.func @transform_2(%arg0: i32) -> (i32, i32) {
    %c0_i32 = arith.constant 0 : i32
    %c0_i32_0 = arith.constant 0 : i32
    %c0_i32_1 = arith.constant 0 : i32
    return %c0_i32, %c0_i32_0 : i32, i32
  }
  func.func @transform_3(%arg0: i32) -> (i32, i32) {
    %c0_i32 = arith.constant 0 : i32
    %c0_i32_0 = arith.constant 0 : i32
    %c0_i32_1 = arith.constant 0 : i32
    return %c0_i32, %c0_i32_0 : i32, i32
  }
  func.func @transform_4(%arg0: i32) -> (i32, i32) {
    %c0_i32 = arith.constant 0 : i32
    %c0_i32_0 = arith.constant 0 : i32
    %c0_i32_1 = arith.constant 0 : i32
    return %c0_i32, %c0_i32_0 : i32, i32
  }
  func.func @transform_5(%arg0: i32) -> (i32, i32, i32) {
    %c0_i32 = arith.constant 0 : i32
    %c0_i32_0 = arith.constant 0 : i32
    %c0_i32_1 = arith.constant 0 : i32
    return %arg0, %c0_i32, %c0_i32_0 : i32, i32, i32
  }
}

</mosaic_0001>

<bundles_post_ra>
// kernel: tpu_custom_call.1
= control target key start
LH: loop header
LB: loop body
LE: loop exit
PB: predicated region body
PF: predicated region fallthrough
CT: control target
= control target key end

     0   :  { %10 = vsyncpa [#allocation4], 0  ;;  %s2083_s0 = inlined_call_operand.hbm [shape: f32[6,8,128], index: 0, kind: input, shape index: {}]   ;;  %s2084_s1 = inlined_call_operand.hbm [shape: f32[8,256], index: 1, kind: input, shape index: {}]   ;;  %s2085_s2 = inlined_call_operand.hbm [shape: f32[128,256], index: 2, kind: input, shape index: {}]   ;;  %s2086_s3 = inlined_call_operand.hbm [shape: f32[256,256], index: 3, kind: input, shape index: {}]   ;;  %s2087_s4 = inlined_call_operand.hbm [shape: f32[32,128], index: 4, kind: input, shape index: {}]   ;;  %s2088_s5 = inlined_call_operand.hbm [shape: f32[6,8,256], index: 5, kind: output, shape index: {}]  }
   0x1   :  { %12 = vsyncpa [#allocation4 + $0x1], 0 }
   0x2   :  { %13 = vsyncpa [#allocation7], 0 }
   0x3   :  { %14 = vsyncpa [#allocation10], 0 }
   0x4   :  { %15 = vsyncpa [#allocation5], 0 }
   0x5   :  { %17 = vsyncpa [#allocation5 + $0x1], 0  ;;  %s1773_s18 = smov 0   ;;  %s1775_s19 = smov 0  }
   0x6   :  { %s1777_s20 = smov 0   ;;  %s1779_s21 = smov 0  }
   0x7 LB: > { %s1717_s22 = smov [#allocation6]   ;;  %s1794_s24 = sadd.s32 4294967295, %s1715_s21   ;;  %s1715_s21 = sphi %s1779_s21, %s2112_s21   ;;  %s1711_s20 = sphi %s1777_s20, %s2111_s20   ;;  %s1707_s19 = sphi %s1775_s19, %s2110_s19   ;;  %s1703_s18 = sphi %s1773_s18, %s2109_s18  }
   0x8   : > { %s177_s23 = sshll.u32 %s1717_s22, 4  ;;  %p1268_p0 = scmp.ge.s32.totalorder %s1715_s21, 1  ;;  %s178_s23 = int_to_ptr.vmem [resolvable:$true] %s177_s23 }
   0x9   : > { %p2089_p1 = scmp.eq.s32.totalorder %s1794_s24, 0  ;;  %p164_p2 = scmp.lt.s32.totalorder %s1715_s21, 7 }
   0xa   : > { %s1718_s26 = smov [#allocation9]   ;;  %s1719_s29 = smov [#allocation8]  }
   0xb   : > { %p1800_p4 = pnand %p1268_p0, %p164_p2  ;;  %s200_s27 = sshll.u32 %s1718_s26, 4  ;;  %s1812_s27 = int_to_ptr.vmem [resolvable:$true] %s200_s27 }
   0xc   : > { %s187_s30 = sshll.u32 %s1719_s29, 4  ;;  %s1522_s6 = scalar_lea.vmem %s178_s23, 256  ;;  %s1814_s30 = int_to_ptr.vmem [resolvable:$true] %s187_s30 }
   0xd   : > { %s2093_s25 = scalar_select %p1800_p4, 1, 0 }
   0xe   : > { %p1392_p5 = pneg %p1800_p4  ;;  %p1523_p8 = scmp.ne.s32.totalorder %s178_s23, %s1522_s6 }
   0xf   : > { %p1530_p11 = scmp.lt.s32.totalorder %s178_s23, %s178_s23  ;;  %p1531_p12 = scmp.lt.s32.totalorder %s1522_s6, %s1522_s6 }
  0x10   : > { %p1808_p6 = pnand %p1392_p5, %p2089_p1 }
  0x11   : > { %p1532_p13 = por %p1531_p12, %p1530_p11 }
  0x12   : > { %p1513_p7 = pneg %p1808_p6 }
  0x14   : > { %p1525_p9 = pnand %p1523_p8, %p1513_p7 }
  0x16   : > { %p1526_p10 = pneg %p1525_p9 }
  0x18   : > { %p1533_p0 = pnand %p1532_p13, %p1526_p10 }
  0x1a   : > { %1536 = shalt.err (!%p1533_p0)
}
  0x1b   : > { %1395 = dma.hbm_to_vmem [thread:$0]  (!%p1808_p6), %s2084_s1, 256, %s178_s23, [#allocation7]  }
  0x1c   : > { %s1548_s9 = scalar_lea.vmem %s1812_s27, 8192  ;;  %p1556_p9 = scmp.lt.s32.totalorder %s1812_s27, %s1812_s27 }
  0x1d   : > { %p1549_p2 = scmp.ne.s32.totalorder %s1812_s27, %s1548_s9  ;;  %p1557_p10 = scmp.lt.s32.totalorder %s1548_s9, %s1548_s9 }
  0x1f   : > { %p1551_p5 = pnand %p1549_p2, %p1513_p7  ;;  %p1558_p11 = por %p1557_p10, %p1556_p9 }
  0x21   : > { %p1552_p8 = pneg %p1551_p5 }
  0x23   : > { %p1559_p12 = pnand %p1558_p11, %p1552_p8 }
  0x25   : > { %1562 = shalt.err (!%p1559_p12)
}
  0x26   : > { %s1720_s10 = smov 256   ;;  %s1721_s11 = smov 16  }
  0x27   : > { %1401 = dma.hbm_to_vmem [thread:$0]  (!%p1808_p6), %s2086_s3, 8192, %s1812_s27, [#allocation10], %s1720_s10, %s1720_s10, %s1721_s11  }
  0x28   : > { %s1574_s14 = scalar_lea.vmem %s1814_s30, 4096  ;;  %p1582_p5 = scmp.lt.s32.totalorder %s1814_s30, %s1814_s30 }
  0x29   : > { %p1575_p13 = scmp.ne.s32.totalorder %s1814_s30, %s1574_s14  ;;  %p1583_p8 = scmp.lt.s32.totalorder %s1574_s14, %s1574_s14 }
  0x2b   : > { %p1577_p0 = pnand %p1575_p13, %p1513_p7  ;;  %p1584_p9 = por %p1583_p8, %p1582_p5 }
  0x2d   : > { %p1578_p2 = pneg %p1577_p0 }
  0x2f   : > { %p1585_p10 = pnand %p1584_p9, %p1578_p2 }
  0x31   : > { %1588 = shalt.err (!%p1585_p10)
}
  0x32   : > { %1398 = dma.hbm_to_vmem [thread:$0]  (!%p1808_p6), %s2085_s2, 4096, %s1814_s30, [#allocation7], %s1720_s10, %s1720_s10, %s1721_s11  }
  0x33   : > { %s1722_s17 = smov [#allocation11]  }
  0x34   : > { %s213_s22 = sshll.u32 %s1722_s17, 4  ;;  %s214_s22 = int_to_ptr.vmem [resolvable:$true] %s213_s22 }
  0x35   : > { %s1600_s23 = scalar_lea.vmem %s214_s22, 512  ;;  %p1608_p0 = scmp.lt.s32.totalorder %s214_s22, %s214_s22 }
  0x36   : > { %p1601_p11 = scmp.ne.s32.totalorder %s214_s22, %s1600_s23  ;;  %p1609_p2 = scmp.lt.s32.totalorder %s1600_s23, %s1600_s23 }
  0x38   : > { %p1603_p12 = pnand %p1601_p11, %p1513_p7  ;;  %p1610_p5 = por %p1609_p2, %p1608_p0 }
  0x3a   : > { %p1604_p13 = pneg %p1603_p12 }
  0x3c   : > { %p1611_p8 = pnand %p1610_p5, %p1604_p13 }
  0x3e   : > { %1614 = shalt.err (!%p1611_p8)
}
  0x3f   : > { %s1723_s26 = smov 128   ;;  %s1724_s27 = smov 8  }
  0x40   : > { %1404 = dma.hbm_to_vmem [thread:$0]  (!%p1808_p6), %s2087_s4, 512, %s214_s22, [#allocation10], %s1723_s26, %s1723_s26, %s1724_s27  }
  0x41   : > { %s1267_s6 = sadd.s32 4294967294, %s1715_s21   ;;  %s1862_s7 = sadd.s32 1, %s1715_s21  }
  0x42   : > { %s27_s8 = ssub.s32 %s1715_s21, %s1862_s7  ;;  %s30_s9 = sadd.s32 1, %s1711_s20 }
  0x43   : > { %p28_p7 = scmp.eq.s32.totalorder %s27_s8, 0  ;;  %p37_p9 = scmp.ne.s32.totalorder %s1711_s20, %s1707_s19 }
  0x44   : > { %p38_p10 = scmp.eq.s32.totalorder %s1715_s21, 0  ;;  %p43_p11 = scmp.ne.s32.totalorder %s1707_s19, %s1703_s18 }
  0x45   : > { %s1873_s10 = scalar_select %p28_p7, %s1711_s20, %s30_s9  }
  0x46   : > { %p1875_p12 = por %p38_p10, %p37_p9  ;;  %p1881_p6 = por %p2089_p1, %p43_p11 }
  0x47   : > { %p151_p13 = scmp.eq.s32.totalorder %s1794_s24, 5  ;;  %p157_p0 = scmp.eq.s32.totalorder %s1267_s6, 5 }
  0x48   : > { %s2096_s11 = scalar_select %p1881_p6, 1, 0 }
  0x49   : > { %p1417_p2 = scmp.lt.s32.totalorder %s1715_s21, 6  ;;  %s227_s12 = sand.u32 1, %s1711_s20  }
  0x4a   : > { %p1888_p5 = por %p151_p13, %p37_p9  ;;  %p1892_p8 = por %p157_p0, %p43_p11 }
  0x4b   : > { %s1274_s15 = sshll.u32 %s227_s12, 3  ;;  %s1275_s16 = sshll.u32 %s1715_s21, 7 }
  0x4c   : > { %s2097_s13 = scalar_select %p1888_p5, 1, 0 }
  0x4d   : > { %s2098_s14 = scalar_select %p1892_p8, 1, 0 }
  0x4e   : > { %s1900_s23 = scalar_lea.hbm %s2083_s0, %s1275_s16  ;;  %s231_s26 = scalar_lea.vmem [#allocation3], %s1274_s15 }
  0x4f   : > { %s238_s27 = sshll.u32 %s231_s26, 4  ;;  %p1904_p7 = pnand %p1417_p2, %p1875_p12  ;;  %s239_s27 = int_to_ptr.vmem [resolvable:$true] %s238_s27 }
  0x50   : > { %s228_s30 = scalar_lea.sflag [#allocation4], %s227_s12  ;;  %s1615_s6 = scalar_lea.hbm %s1900_s23, 128 }
  0x51   : > { %p1616_p9 = scmp.ne.s32.totalorder %s1900_s23, %s1615_s6  ;;  %p1617_p10 = pneg %p1904_p7 }
  0x52   : > { %s1620_s16 = scalar_lea.hbm %s2083_s0, 768  ;;  %p1621_p0 = scmp.lt.s32.totalorder %s1900_s23, %s2083_s0 }
  0x53   : > { %p1618_p11 = pnand %p1617_p10, %p1616_p9  ;;  %p1622_p12 = scmp.lt.s32.totalorder %s1620_s16, %s1615_s6 }
  0x55   : > { %p1619_p13 = pneg %p1618_p11  ;;  %p1623_p2 = por %p1622_p12, %p1621_p0 }
  0x57   : > { %p1624_p3 = pnand %p1623_p2, %p1619_p13 }
  0x59   : > { %1627 = shalt.err (!%p1624_p3)
}
  0x5a   : > { %s1628_s28 = scalar_lea.vmem %s239_s27, 128  ;;  %s1725_s12 = smov [#allocation3]  }
  0x5b   : > { %p1629_p1 = scmp.ne.s32.totalorder %s239_s27, %s1628_s28  ;;  %s1633_s22 = sshll.u32 %s1725_s12, 4  ;;  %s1634_s22 = int_to_ptr.vmem [resolvable:$false] %s1633_s22 }
  0x5c   : > { %s1635_s26 = scalar_lea.vmem %s1634_s22, 256  ;;  %p1636_p9 = scmp.lt.s32.totalorder %s239_s27, %s1634_s22 }
  0x5d   : > { %p1631_p8 = pnand %p1629_p1, %p1617_p10  ;;  %p1637_p11 = scmp.lt.s32.totalorder %s1635_s26, %s1628_s28 }
  0x5f   : > { %p1632_p5 = pneg %p1631_p8  ;;  %p1638_p6 = por %p1637_p11, %p1636_p9 }
  0x61   : > { %p1639_p4 = pnand %p1638_p6, %p1632_p5 }
  0x63   : > { %1642 = shalt.err (!%p1639_p4)
}
  0x64   : > { %1408 = dma.hbm_to_vmem [thread:$0]  (!%p1904_p7), %s1900_s23, 128, %s239_s27, %s228_s30  }
  0x65   : > { %p2100_p13 = scmp.ne.s32.totalorder %s2093_s25, 0 }
  0x66   : > { %s1925_s6 = sand.u32 (!%p2100_p13), 1, %s1707_s19   ;;  %p2101_p1 = scmp.ne.s32.totalorder (!%p2100_p13), %s2096_s11, 0 }
  0x67   : > { %247 = sbr.rel (%p2100_p13) target bundleno = 2776 (0xad8), region = 40  ;;  %s1277_s8 = sshll.u32 (!%p2100_p13), %s1925_s6, 3 }
  0x68   : > { %s250_s9 = scalar_lea.sflag (!%p2100_p13), [#allocation4], %s1925_s6  ;;  %s1929_s16 = scalar_lea.vmem (!%p2100_p13), [#allocation3], %s1277_s8 }
  0x6c   : > { %1686 = dma.done.wait (%p2101_p1), %s250_s9, 128  }
  0x6d   : > { %1688 = vsyncadd (%p2101_p1), %s250_s9, 4294967168  ;;  %p2102_p3 = scmp.eq.s32.totalorder %s1794_s24, 0 }
  0x6f   : > { %1690 = dma.done.wait (%p2102_p3), [#allocation7], 4352   ;;  %p2103_p4 = pmov %p2102_p3 }
  0x70   : > { %p2104_p6 = pmov %p2102_p3 }
  0x71   : > { %1692 = vsyncadd (%p2103_p4), [#allocation7], 4294962944 }
  0x72   : > { %1694 = dma.done.wait (%p2104_p6), [#allocation10], 8704   ;;  %p2105_p5 = pmov %p2102_p3 }
  0x73   : > { %s1282_s25 = sshll.u32 %s1925_s6, 4  ;;  %p2106_p8 = scmp.ne.s32.totalorder %s1794_s24, 0 }
  0x74   : > { %1696 = vsyncadd (%p2105_p5), [#allocation10], 4294958592  ;;  %s1944_s23 = scalar_lea.vmem [#allocation12], %s1282_s25 }
  0x75   : > { %299 = sbr.rel (%p2106_p8) target bundleno = 124 (0x7c), region = 64 }
  0x7a   : > { %v300_v0 = vld [vmem:[#allocation6] sm:$0xff]  ;;  %v301_v1 = vld [vmem:[#allocation6 + $0x8] sm:$0xff] }
  0x7b   : > { %302 = vst [vmem:[#allocation2] sm:$0xff] %v300_v0  ;;  %303 = vst [vmem:[#allocation2 + $0x8] sm:$0xff] %v301_v1 }
  0x7c PF: > { %v370_v2 = vld [vmem:[#allocation9 + $0xf8] sm:$0xff]  ;;  %v369_v3 = vld [vmem:[#allocation9 + $0xf0] sm:$0xff]  ;;  %v368_v4 = vld [vmem:[#allocation9 + $0xe8] sm:$0xff]  ;;  %v1726_v6 = vmov 0.0   ;;  %vm1727_vm0 = vmmov 0   ;;  %s1728_s11 = smov 82  }
  0x7d   : > { %403 = vmatprep.subr.mxu0 %v370_v2  ;;  %v367_v5 = vld [vmem:[#allocation9 + $0xe0] sm:$0xff]  ;;  %538 = vmatprep.mubr.f32.mxu1 %v1726_v6  ;;  %v366_v7 = vld [vmem:[#allocation9 + $0xd8] sm:$0xff]  ;;  %v365_v8 = vld [vmem:[#allocation9 + $0xd0] sm:$0xff]  ;;  %vm557_vm1 = vcmask 130048   ;;  %s1729_s27 = smov 62   ;;  %s1730_s29 = smov 108  }
  0x7e   : > { %404 = vmatpush1.msra.mxu0 %v369_v3  ;;  %v364_v9 = vld [vmem:[#allocation9 + $0xc8] sm:$0xff]  ;;  %v363_v10 = vld [vmem:[#allocation9 + $0xc0] sm:$0xff]  ;;  %v362_v11 = vld [vmem:[#allocation9 + $0xb8] sm:$0xff]  ;;  %vm658_vm2 = vcmask 1043456   ;;  %s1731_s30 = smov 66   ;;  %vm655_vm3 = vcmask 162816  }
  0x7f   : > { %405 = vmatprep.subr.mxu0 %v368_v4  ;;  %v361_v12 = vld [vmem:[#allocation9 + $0xb0] sm:$0xff]  ;;  %v360_v13 = vld [vmem:[#allocation9 + $0xa8] sm:$0xff]  ;;  %v359_v14 = vld [vmem:[#allocation9 + $0xa0] sm:$0xff]  ;;  %s1732_s15 = smov 70   ;;  %s1733_s17 = smov 80   ;;  %vm955_vm4 = vcmask 97280  }
  0x80   : > { %406 = vmatpush1.msra.mxu0 %v367_v5  ;;  %v358_v15 = vld [vmem:[#allocation9 + $0x98] sm:$0xff]  ;;  %v357_v17 = vld [vmem:[#allocation9 + $0x90] sm:$0xff]  ;;  %v336_v19 = vld [vmem:[#allocation8 + $0xe8] sm:$0xff]  ;;  %s1734_s28 = smov 46   ;;  %s1735_s12 = smov 98   ;;  %vm1113_vm5 = vcmask 64512  }
  0x81   : > { %407 = vmatprep.subr.mxu0 %v366_v7  ;;  %v338_v16 = vld [vmem:[#allocation8 + $0xf8] sm:$0xff]  ;;  %v337_v18 = vld [vmem:[#allocation8 + $0xf0] sm:$0xff]  ;;  %v356_v20 = vld [vmem:[#allocation9 + $0x88] sm:$0xff]  ;;  %s1736_s22 = smov 60   ;;  %s1737_s26 = smov 30   ;;  %vm1127_vm6 = vcmask 244736  }
  0x82   : > { %408 = vmatpush1.msra.mxu0 %v365_v8  ;;  %474 = vmatprep.subr.mxu1 %v338_v16  ;;  %v335_v21 = vld [vmem:[#allocation8 + $0xe0] sm:$0xff]  ;;  %v334_v23 = vld [vmem:[#allocation8 + $0xd8] sm:$0xff]  ;;  %v333_v24 = vld [vmem:[#allocation8 + $0xd0] sm:$0xff]  ;;  %s1738_s8 = smov 38   ;;  %s1739_s9 = smov 8   ;;  %vm1129_vm7 = vcmask 375808  }
  0x83   : > { %409 = vmatprep.subr.mxu0 %v364_v9  ;;  %475 = vmatpush1.msra.mxu1 %v337_v18  ;;  %v355_v22 = vld [vmem:[#allocation9 + $0x80] sm:$0xff]  ;;  %v354_v25 = vld [vmem:[#allocation9 + $0x78] sm:$0xff]  ;;  %v332_v26 = vld [vmem:[#allocation8 + $0xc8] sm:$0xff]  ;;  %s1741_s25 = smov 118   ;;  %vm1131_vm8 = vcmask 506880   ;;  %vm1133_vm9 = vcmask 670720  }
  0x84   : > { %410 = vmatpush1.msra.mxu0 %v363_v10  ;;  %476 = vmatprep.subr.mxu1 %v336_v19  ;;  %v353_v27 = vld [vmem:[#allocation9 + $0x70] sm:$0xff]  ;;  %v331_v28 = vld [vmem:[#allocation8 + $0xc0] sm:$0xff]  ;;  %v352_v29 = vld [vmem:[#allocation9 + $0x68] sm:$0xff]  ;;  %vm1135_vm10 = vcmask 801792   ;;  %vm1137_vm11 = vcmask 965632   ;;  %p2107_p10 = scmp.ne.s32.totalorder %s2097_s13, 0 }
  0x85   : > { %411 = vmatprep.subr.mxu0 %v362_v11  ;;  %477 = vmatpush1.msra.mxu1 %v335_v21  ;;  %v330_v30 = vld [vmem:[#allocation8 + $0xb8] sm:$0xff]  ;;  %v351_v31 = vld [vmem:[#allocation9 + $0x60] sm:$0xff]  ;;  %v329_v32 = vld [vmem:[#allocation8 + $0xb0] sm:$0xff] }
  0x86   : > { %412 = vmatpush1.msra.mxu0 %v361_v12  ;;  %478 = vmatprep.subr.mxu1 %v334_v23  ;;  %v350_v33 = vld [vmem:[#allocation9 + $0x58] sm:$0xff]  ;;  %v328_v34 = vld [vmem:[#allocation8 + $0xa8] sm:$0xff]  ;;  %v349_v35 = vld [vmem:[#allocation9 + $0x50] sm:$0xff] }
  0x87   : > { %413 = vmatprep.subr.mxu0 %v360_v13  ;;  %479 = vmatpush1.msra.mxu1 %v333_v24  ;;  %v327_v36 = vld [vmem:[#allocation8 + $0xa0] sm:$0xff]  ;;  %v348_v37 = vld [vmem:[#allocation9 + $0x48] sm:$0xff]  ;;  %v326_v38 = vld [vmem:[#allocation8 + $0x98] sm:$0xff] }
  0x88   : > { %414 = vmatpush1.msra.mxu0 %v359_v14  ;;  %480 = vmatprep.subr.mxu1 %v332_v26  ;;  %v347_v39 = vld [vmem:[#allocation9 + $0x40] sm:$0xff]  ;;  %v325_v40 = vld [vmem:[#allocation8 + $0x90] sm:$0xff]  ;;  %v346_v41 = vld [vmem:[#allocation9 + $0x38] sm:$0xff] }
  0x89   : > { %415 = vmatprep.subr.mxu0 %v358_v15  ;;  %481 = vmatpush1.msra.mxu1 %v331_v28  ;;  %v324_v42 = vld [vmem:[#allocation8 + $0x88] sm:$0xff]  ;;  %v345_v43 = vld [vmem:[#allocation9 + $0x30] sm:$0xff]  ;;  %v323_v44 = vld [vmem:[#allocation8 + $0x80] sm:$0xff] }
  0x8a   : > { %416 = vmatpush1.msra.mxu0 %v357_v17  ;;  %482 = vmatprep.subr.mxu1 %v330_v30  ;;  %v344_v45 = vld [vmem:[#allocation9 + $0x28] sm:$0xff]  ;;  %v322_v46 = vld [vmem:[#allocation8 + $0x78] sm:$0xff]  ;;  %v343_v47 = vld [vmem:[#allocation9 + $0x20] sm:$0xff] }
  0x8b   : > { %417 = vmatprep.subr.mxu0 %v356_v20  ;;  %483 = vmatpush1.msra.mxu1 %v329_v32  ;;  %v321_v48 = vld [vmem:[#allocation8 + $0x70] sm:$0xff]  ;;  %v342_v49 = vld [vmem:[#allocation9 + $0x18] sm:$0xff]  ;;  %v320_v50 = vld [vmem:[#allocation8 + $0x68] sm:$0xff] }
  0x8c   : > { %418 = vmatpush1.msra.mxu0 %v355_v22  ;;  %484 = vmatprep.subr.mxu1 %v328_v34  ;;  %v341_v51 = vld [vmem:[#allocation9 + $0x10] sm:$0xff]  ;;  %v319_v52 = vld [vmem:[#allocation8 + $0x60] sm:$0xff]  ;;  %v340_v53 = vld [vmem:[#allocation9 + $0x8] sm:$0xff] }
  0x8d   : > { %419 = vmatprep.subr.mxu0 %v354_v25  ;;  %485 = vmatpush1.msra.mxu1 %v327_v36  ;;  %v318_v54 = vld [vmem:[#allocation8 + $0x58] sm:$0xff]  ;;  %v339_v55 = vld [vmem:[#allocation9] sm:$0xff]  ;;  %v317_v56 = vld [vmem:[#allocation8 + $0x50] sm:$0xff] }
  0x8e   : > { %420 = vmatpush1.msra.mxu0 %v353_v27  ;;  %486 = vmatprep.subr.mxu1 %v326_v38  ;;  %v402_v57 = vld [vmem:[#allocation9 + $0x1f8] sm:$0xff]  ;;  %v316_v58 = vld [vmem:[#allocation8 + $0x48] sm:$0xff]  ;;  %v401_v59 = vld [vmem:[#allocation9 + $0x1f0] sm:$0xff] }
  0x8f   : > { %421 = vmatprep.subr.mxu0 %v352_v29  ;;  %487 = vmatpush1.msra.mxu1 %v325_v40  ;;  %v315_v60 = vld [vmem:[#allocation8 + $0x40] sm:$0xff]  ;;  %v400_v61 = vld [vmem:[#allocation9 + $0x1e8] sm:$0xff]  ;;  %v314_v62 = vld [vmem:[#allocation8 + $0x38] sm:$0xff] }
  0x90   : > { %422 = vmatpush1.msra.mxu0 %v351_v31  ;;  %488 = vmatprep.subr.mxu1 %v324_v42  ;;  %v399_v63 = vld [vmem:[#allocation9 + $0x1e0] sm:$0xff]  ;;  %v313_v0 = vld [vmem:[#allocation8 + $0x30] sm:$0xff]  ;;  %v398_v1 = vld [vmem:[#allocation9 + $0x1d8] sm:$0xff] }
  0x91   : > { %423 = vmatprep.subr.mxu0 %v350_v33  ;;  %489 = vmatpush1.msra.mxu1 %v323_v44  ;;  %v312_v2 = vld [vmem:[#allocation8 + $0x28] sm:$0xff]  ;;  %v397_v3 = vld [vmem:[#allocation9 + $0x1d0] sm:$0xff]  ;;  %v311_v4 = vld [vmem:[#allocation8 + $0x20] sm:$0xff] }
  0x92   : > { %424 = vmatpush1.msra.mxu0 %v349_v35  ;;  %490 = vmatprep.subr.mxu1 %v322_v46  ;;  %v396_v5 = vld [vmem:[#allocation9 + $0x1c8] sm:$0xff]  ;;  %v310_v7 = vld [vmem:[#allocation8 + $0x18] sm:$0xff]  ;;  %v395_v8 = vld [vmem:[#allocation9 + $0x1c0] sm:$0xff] }
  0x93   : > { %425 = vmatprep.subr.mxu0 %v348_v37  ;;  %491 = vmatpush1.msra.mxu1 %v321_v48  ;;  %v309_v9 = vld [vmem:[#allocation8 + $0x10] sm:$0xff]  ;;  %v394_v10 = vld [vmem:[#allocation9 + $0x1b8] sm:$0xff]  ;;  %v308_v11 = vld [vmem:[#allocation8 + $0x8] sm:$0xff] }
  0x94   : > { %426 = vmatpush1.msra.mxu0 %v347_v39  ;;  %492 = vmatprep.subr.mxu1 %v320_v50  ;;  %v393_v12 = vld [vmem:[#allocation9 + $0x1b0] sm:$0xff]  ;;  %v307_v13 = vld [vmem:[#allocation8] sm:$0xff]  ;;  %v392_v14 = vld [vmem:[#allocation9 + $0x1a8] sm:$0xff] }
  0x95   : > { %427 = vmatprep.subr.mxu0 %v346_v41  ;;  %493 = vmatpush1.msra.mxu1 %v319_v52  ;;  %v304_v15 = vld [vmem:[%s1929_s16] sm:$0xff]  ;;  %v306_v17 = vld [vmem:[#allocation2 + $0x8] sm:$0xff]  ;;  %v389_v19 = vld [vmem:[#allocation9 + $0x190] sm:$0xff]  ;;  %s1740_s16 = smov 20  }
  0x96   : > { %428 = vmatpush1.msra.mxu0 %v345_v43  ;;  %494 = vmatprep.subr.mxu1 %v318_v54  ;;  %v391_v16 = vld [vmem:[#allocation9 + $0x1a0] sm:$0xff]  ;;  %v390_v18 = vld [vmem:[#allocation9 + $0x198] sm:$0xff]  ;;  %v388_v20 = vld [vmem:[#allocation9 + $0x188] sm:$0xff] }
  0x97   : > { %429 = vmatprep.subr.mxu0 %v344_v45  ;;  %495 = vmatpush1.msra.mxu1 %v317_v56  ;;  %v387_v21 = vld [vmem:[#allocation9 + $0x180] sm:$0xff]  ;;  %v386_v22 = vld [vmem:[#allocation9 + $0x178] sm:$0xff]  ;;  %v385_v23 = vld [vmem:[#allocation9 + $0x170] sm:$0xff] }
  0x98   : > { %430 = vmatpush1.msra.mxu0 %v343_v47  ;;  %496 = vmatprep.subr.mxu1 %v316_v58  ;;  %v384_v24 = vld [vmem:[#allocation9 + $0x168] sm:$0xff]  ;;  %v383_v25 = vld [vmem:[#allocation9 + $0x160] sm:$0xff]  ;;  %v382_v26 = vld [vmem:[#allocation9 + $0x158] sm:$0xff] }
  0x99   : > { %431 = vmatprep.subr.mxu0 %v342_v49  ;;  %497 = vmatpush1.msra.mxu1 %v315_v60  ;;  %v381_v27 = vld [vmem:[#allocation9 + $0x150] sm:$0xff]  ;;  %v380_v28 = vld [vmem:[#allocation9 + $0x148] sm:$0xff]  ;;  %v379_v29 = vld [vmem:[#allocation9 + $0x140] sm:$0xff] }
  0x9a   : > { %432 = vmatpush1.msra.mxu0 %v341_v51  ;;  %498 = vmatprep.subr.mxu1 %v314_v62  ;;  %v378_v30 = vld [vmem:[#allocation9 + $0x138] sm:$0xff]  ;;  %v377_v31 = vld [vmem:[#allocation9 + $0x130] sm:$0xff]  ;;  %v376_v32 = vld [vmem:[#allocation9 + $0x128] sm:$0xff] }
  0x9b   : > { %433 = vmatprep.subr.mxu0 %v340_v53  ;;  %499 = vmatpush1.msra.mxu1 %v313_v0  ;;  %v375_v33 = vld [vmem:[#allocation9 + $0x120] sm:$0xff]  ;;  %v374_v34 = vld [vmem:[#allocation9 + $0x118] sm:$0xff]  ;;  %v373_v35 = vld [vmem:[#allocation9 + $0x110] sm:$0xff] }
  0x9c   : > { %434 = vmatpush1.msra.mxu0 %v339_v55  ;;  %500 = vmatprep.subr.mxu1 %v312_v2  ;;  %v372_v36 = vld [vmem:[#allocation9 + $0x108] sm:$0xff]  ;;  %v371_v37 = vld [vmem:[#allocation9 + $0x100] sm:$0xff]  ;;  %v305_v38 = vld [vmem:[#allocation2] sm:$0xff] }
  0x9d   : > { %435 = vmatprep.subr.mxu0 %v402_v57  ;;  %501 = vmatpush1.msra.mxu1 %v311_v4  ;;  %v1951_v39 = vld [vmem:[#allocation11 + $0x8] sm:$0xff]  ;;  %v1953_v40 = vld [vmem:[#allocation11] sm:$0xff]  ;;  %v547_v52 = vld [vmem:[#allocation11 + $0x10] sm:$0xff] }
  0x9e   : > { %436 = vmatpush2.msra.mxu0 %v401_v59  ;;  %502 = vmatprep.subr.mxu1 %v310_v7 }
  0x9f   : > { %437 = vmatprep.subr.mxu0 %v400_v61  ;;  %503 = vmatpush1.msra.mxu1 %v309_v9 }
  0xa0   : > { %438 = vmatpush2.msra.mxu0 %v399_v63  ;;  %504 = vmatprep.subr.mxu1 %v308_v11 }
  0xa1   : > { %439 = vmatprep.subr.mxu0 %v398_v1  ;;  %505 = vmatpush1.msra.mxu1 %v307_v13 }
  0xa2   : > { %440 = vmatpush2.msra.mxu0 %v397_v3  ;;  %539 = vmatmul.mubr.f32.vlgmr.msra.gmra.mxu1 %v304_v15 }
  0xa3   : > { %441 = vmatprep.subr.mxu0 %v396_v5  ;;  %467 = vmatprep.mubr.f32.mxu0 %v306_v17 }
  0xa4   : > { %442 = vmatpush2.msra.mxu0 %v395_v8  ;;  %1326 = vmatprep.subr.mxu1 %v1726_v6 }
  0xa5   : > { %443 = vmatprep.subr.mxu0 %v394_v10  ;;  %1327 = vmatpush3.msra.mxu1 %v1951_v39 }
  0xa6   : > { %444 = vmatpush2.msra.mxu0 %v393_v12  ;;  %1330 = vmatprep.mubr.msk.f32.mxu1 %vm1727_vm0, %v1726_v6 }
  0xa7   : > { %445 = vmatprep.subr.mxu0 %v392_v14  ;;  %1328 = vmatprep.subr.mxu1 %v1726_v6 }
  0xa8   : > { %446 = vmatpush2.msra.mxu0 %v391_v16  ;;  %1329 = vmatpush3.msra.mxu1 %v1953_v40 }
  0xa9   : > { %447 = vmatprep.subr.mxu0 %v390_v18  ;;  %1333 = vmatprep.subr.mxu1 %v1726_v6 }
  0xaa   : > { %448 = vmatpush2.msra.mxu0 %v389_v19  ;;  %651 = vrot.lane.b32.xlu1 %v547_v52, %s1730_s29 }
  0xab   : > { %449 = vmatprep.subr.mxu0 %v388_v20 }
  0xac   : > { %450 = vmatpush2.msra.mxu0 %v387_v21 }
  0xad   : > { %451 = vmatprep.subr.mxu0 %v386_v22 }
  0xae   : > { %452 = vmatpush2.msra.mxu0 %v385_v23  ;;  %649 = vrot.lane.b32.xlu1 %v1951_v39, %s1730_s29 }
  0xaf   : > { %453 = vmatprep.subr.mxu0 %v384_v24 }
  0xb0   : > { %454 = vmatpush2.msra.mxu0 %v383_v25 }
  0xb1   : > { %455 = vmatprep.subr.mxu0 %v382_v26 }
  0xb2   : > { %456 = vmatpush2.msra.mxu0 %v381_v27 }
  0xb3   : > { %457 = vmatprep.subr.mxu0 %v380_v28 }
  0xb4   : > { %458 = vmatpush2.msra.mxu0 %v379_v29 }
  0xb5   : > { %459 = vmatprep.subr.mxu0 %v378_v30 }
  0xb6   : > { %460 = vmatpush2.msra.mxu0 %v377_v31 }
  0xb7   : > { %461 = vmatprep.subr.mxu0 %v376_v32 }
  0xb8   : > { %462 = vmatpush2.msra.mxu0 %v375_v33 }
  0xb9   : > { %463 = vmatprep.subr.mxu0 %v374_v34 }
  0xba   : > { %464 = vmatpush2.msra.mxu0 %v373_v35 }
  0xbb   : > { %465 = vmatprep.subr.mxu0 %v372_v36 }
  0xbc   : > { %466 = vmatpush2.msra.mxu0 %v371_v37 }
  0xbd   : > { %468 = vmatmul.mubr.f32.vlgmr.msra.gmra.mxu0 %v305_v38 }
 0x11c   : > { %v652_v56 = vpop.permute.xlu1 %651 }
 0x120   : > { %v650_v57 = vpop.permute.xlu1 %649 }
 0x162   : > { %v540_v41 = vpop.f32.mrf.mxu1 }
 0x164   : > { %v1970_v49 = vpop.f32.mrf.mxu1 }
 0x17d   : > { %v469_v42 = vpop.f32.mrf.mxu0 }
 0x17e   : > { %v1961_v43 = vadd.f32 %v540_v41, %v469_v42 }
 0x17f   : > { %v471_v26 = vpop.f32.mrf.mxu0 }
 0x180   : > { %v1284_v44 = vmul.f32 -1.442695, %v1961_v43  ;;  %v543_v27 = vadd.f32 %v1970_v49, %v471_v26 }
 0x182   : > { %1479 = vpow2.f32 %v1284_v44 }
 0x18f   : > { %v1480_v45 = vpop.eup %1479 }
 0x190   : > { %v551_v46 = vadd.f32 1.0, %v1480_v45 }
 0x192   : > { %1481 = vrcp.f32 %v551_v46 }
 0x19f   : > { %v1964_v47 = vpop.eup %1481 }
 0x1a0   : > { %555 = vrot.lane.b32.xlu0 %v1964_v47, %s1728_s11  ;;  %s1305_s11 = sshll.u32 %s1794_s24, 8  ;;  %s1145_s24 = scalar_lea.sflag [#allocation5], %s1925_s6 }
 0x212   : > { %v556_v48 = vpop.permute.xlu0 %555 }
 0x213   : > { %1331 = vmatmul.mubr.msk.f32.vlgmr.msra.gmra.mxu1 %vm557_vm1, %v556_v48 }
 0x214   : > { %1339 = vmatprep.mubr.msk.f32.mxu1 %vm1727_vm0, %v1726_v6  ;;  %1334 = vmatpush3.msk.msra.mxu1 %vm658_vm2, %v652_v56 }
 0x215   : > { %1335 = vmatprep.subr.mxu1 %v1726_v6 }
 0x216   : > { %1336 = vmatpush3.msra.mxu1 %v650_v57 }
 0x217   : > { %1337 = vmatprep.subr.mxu1 %v1726_v6 }
 0x2d3   : > { %v626_v50 = vpop.f32.mrf.mxu1 }
 0x2d4   : > { %631 = vrot.lane.b32.xlu0 %v626_v50, %s1729_s27  ;;  %s1159_s27 = sshll.u32 %s1944_s23, 4  ;;  %s2042_s27 = int_to_ptr.vmem [resolvable:$true] %s1159_s27 }
 0x2d5   : > { %v1332_v51 = vpop.f32.mrf.mxu1 }
 0x2d8   : > { %647 = vrot.lane.b32.xlu0 %v1953_v40, %s1730_s29 }
 0x346   : > { %v632_v53 = vpop.permute.xlu0 %631 }
 0x347   : > { %v634_v54 = vadd.f32 %v632_v53, %v1961_v43 }
 0x349   : > { %v1286_v55 = vmul.f32 -1.442695, %v634_v54 }
 0x34a   : > { %v648_v58 = vpop.permute.xlu0 %647 }
 0x34b   : > { %1483 = vpow2.f32 %v1286_v55  ;;  %1338 = vmatpush3.msra.mxu1 %v648_v58 }
 0x34c   : > { %1342 = vmatprep.subr.mxu1 %v1726_v6 }
 0x358   : > { %v1484_v59 = vpop.eup %1483 }
 0x359   : > { %v638_v60 = vadd.f32 1.0, %v1484_v59 }
 0x35b   : > { %1485 = vrcp.f32 %v638_v60 }
 0x368   : > { %v1979_v61 = vpop.eup %1485 }
 0x369   : > { %642 = vrot.lane.b32.xlu1 %v1979_v61, %s1731_s30 }
 0x36d   : > { %757 = vrot.lane.b32.xlu1 %v1951_v39, %s1733_s17 }
 0x3db   : > { %v643_v62 = vpop.permute.xlu1 %642 }
 0x3dc   : > { %1340 = vmatmul.mubr.msk.f32.vlgmr.msra.gmra.mxu1 %vm655_vm3, %v643_v62 }
 0x3dd   : > { %1346 = vmatprep.mubr.msk.f32.mxu1 %vm1727_vm0, %v1726_v6 }
 0x3df   : > { %v758_v4 = vpop.permute.xlu1 %757 }
 0x3e0   : > { %1343 = vmatpush3.msra.mxu1 %v758_v4 }
 0x3e1   : > { %1344 = vmatprep.subr.mxu1 %v1726_v6 }
 0x49c   : > { %v727_v63 = vpop.f32.mrf.mxu1 }
 0x49d   : > { %742 = vrot.lane.b32.xlu0 %v727_v63, %s1732_s15  ;;  %s2040_s15 = scalar_lea.hbm %s2088_s5, %s1305_s11 }
 0x49e   : > { %v1341_v0 = vpop.f32.mrf.mxu1 }
 0x4a1   : > { %755 = vrot.lane.b32.xlu0 %v1953_v40, %s1733_s17  ;;  %s1643_s17 = scalar_lea.vmem %s2042_s27, 256 }
 0x4a2   : > { %p1644_p7 = scmp.ne.s32.totalorder %s2042_s27, %s1643_s17 }
 0x4a4   : > { %p1645_p0 = pnand %p1644_p7, %p2107_p10 }
 0x4a6   : > { %p1646_p12 = pneg %p1645_p0 }
 0x50f   : > { %v743_v1 = vpop.permute.xlu0 %742 }
 0x510   : > { %v745_v2 = vadd.f32 %v743_v1, %v1961_v43 }
 0x512   : > { %v1290_v3 = vmul.f32 -1.442695, %v745_v2 }
 0x513   : > { %v756_v5 = vpop.permute.xlu0 %755 }
 0x514   : > { %1487 = vpow2.f32 %v1290_v3  ;;  %1345 = vmatpush3.msra.mxu1 %v756_v5 }
 0x515   : > { %1349 = vmatprep.subr.mxu1 %v1726_v6 }
 0x521   : > { %v1488_v7 = vpop.eup %1487 }
 0x522   : > { %v749_v8 = vadd.f32 1.0, %v1488_v7 }
 0x524   : > { %1489 = vrcp.f32 %v749_v8 }
 0x531   : > { %v1990_v9 = vpop.eup %1489 }
 0x532   : > { %753 = vrot.lane.b32.xlu1 %v1990_v9, %s1734_s28  ;;  %s1742_s28 = smov [#allocation12]  }
 0x536   : > { %851 = vrot.lane.b32.xlu1 %v547_v52, %s1736_s22 }
 0x53a   : > { %847 = vrot.lane.b32.xlu1 %v1953_v40, %s1736_s22 }
 0x5a4   : > { %v754_v10 = vpop.permute.xlu1 %753 }
 0x5a5   : > { %1347 = vmatmul.mubr.msk.f32.vlgmr.msra.gmra.mxu1 %vm557_vm1, %v754_v10 }
 0x5a6   : > { %1355 = vmatprep.mubr.msk.f32.mxu1 %vm1727_vm0, %v1726_v6 }
 0x5a8   : > { %v852_v16 = vpop.permute.xlu1 %851 }
 0x5a9   : > { %1350 = vmatpush3.msk.msra.mxu1 %vm658_vm2, %v852_v16 }
 0x5aa   : > { %1351 = vmatprep.subr.mxu1 %v1726_v6 }
 0x5ac   : > { %v848_v18 = vpop.permute.xlu1 %847 }
 0x665   : > { %v829_v11 = vpop.f32.mrf.mxu1 }
 0x666   : > { %834 = vrot.lane.b32.xlu0 %v829_v11, %s1735_s12 }
 0x667   : > { %v1348_v12 = vpop.f32.mrf.mxu1 }
 0x66a   : > { %849 = vrot.lane.b32.xlu0 %v1951_v39, %s1736_s22 }
 0x6d8   : > { %v835_v13 = vpop.permute.xlu0 %834 }
 0x6d9   : > { %v837_v14 = vadd.f32 %v835_v13, %v1961_v43 }
 0x6db   : > { %v1292_v15 = vmul.f32 -1.442695, %v837_v14 }
 0x6dc   : > { %v850_v17 = vpop.permute.xlu0 %849 }
 0x6dd   : > { %1491 = vpow2.f32 %v1292_v15  ;;  %1352 = vmatpush3.msra.mxu1 %v850_v17 }
 0x6de   : > { %1353 = vmatprep.subr.mxu1 %v1726_v6 }
 0x6df   : > { %1354 = vmatpush3.msra.mxu1 %v848_v18 }
 0x6e0   : > { %1358 = vmatprep.subr.mxu1 %v1726_v6 }
 0x6ea   : > { %v1492_v19 = vpop.eup %1491 }
 0x6eb   : > { %v841_v20 = vadd.f32 1.0, %v1492_v19 }
 0x6ed   : > { %1493 = vrcp.f32 %v841_v20 }
 0x6fa   : > { %v2003_v21 = vpop.eup %1493 }
 0x6fb   : > { %845 = vrot.lane.b32.xlu0 %v2003_v21, %s1737_s26 }
 0x6ff   : > { %952 = vrot.lane.b32.xlu0 %v1951_v39, %s1738_s8 }
 0x703   : > { %1036 = vrot.lane.b32.xlu0 %v1951_v39, %s1737_s26 }
 0x707   : > { %1032 = vrot.lane.b32.xlu0 %v1964_v47, %s1735_s12  ;;  %s1647_s12 = sshll.u32 %s1742_s28, 4  ;;  %s1648_s12 = int_to_ptr.vmem [resolvable:$false] %s1647_s12 }
 0x708   : > { %s1649_s22 = scalar_lea.vmem %s1648_s12, 512  ;;  %p1650_p2 = scmp.lt.s32.totalorder %s2042_s27, %s1648_s12 }
 0x709   : > { %p1651_p9 = scmp.lt.s32.totalorder %s1649_s22, %s1643_s17 }
 0x70b   : > { %732 = vrot.lane.b32.xlu0 %v727_v63, %s1739_s9  ;;  %p1652_p11 = por %p1651_p9, %p1650_p2 }
 0x70d   : > { %p1653_p13 = pnand %p1652_p11, %p1646_p12 }
 0x76d   : > { %v846_v22 = vpop.permute.xlu0 %845 }
 0x76e   : > { %1356 = vmatmul.mubr.msk.f32.vlgmr.msra.gmra.mxu1 %vm655_vm3, %v846_v22 }
 0x76f   : > { %1362 = vmatprep.mubr.msk.f32.mxu1 %vm1727_vm0, %v1726_v6 }
 0x771   : > { %v953_v23 = vpop.permute.xlu0 %952 }
 0x772   : > { %1359 = vmatpush3.msk.msra.mxu1 %vm658_vm2, %v953_v23 }
 0x773   : > { %1360 = vmatprep.subr.mxu1 %v1726_v6 }
 0x775   : > { %v1037_v34 = vpop.permute.xlu0 %1036 }
 0x779   : > { %v1033_v38 = vpop.permute.xlu0 %1032 }
 0x77d   : > { %v733_v52 = vpop.permute.xlu0 %732 }
 0x77e   : > { %v735_v54 = vadd.f32 %v733_v52, %v1961_v43 }
 0x780   : > { %v1289_v56 = vmul.f32 -1.442695, %v735_v54 }
 0x82e   : > { %v925_v24 = vpop.f32.mrf.mxu1 }
 0x82f   : > { %930 = vrot.lane.b32.xlu0 %v925_v24, %s1740_s16  ;;  %940 = vrot.lane.b32.xlu1 %v925_v24, %s1741_s25 }
 0x830   : > { %v1357_v25 = vpop.f32.mrf.mxu1 }
 0x833   : > { %950 = vrot.lane.b32.xlu1 %v1953_v40, %s1738_s8 }
 0x837   : > { %1034 = vrot.lane.b32.xlu1 %v1953_v40, %s1737_s26 }
 0x8a1   : > { %v941_v28 = vpop.permute.xlu1 %940  ;;  %v931_v53 = vpop.permute.xlu0 %930 }
 0x8a2   : > { %v943_v29 = vadd.f32 %v941_v28, %v543_v27  ;;  %v933_v55 = vadd.f32 %v931_v53, %v1961_v43 }
 0x8a4   : > { %v1296_v30 = vmul.f32 -1.442695, %v943_v29  ;;  %v1295_v57 = vmul.f32 -1.442695, %v933_v55 }
 0x8a5   : > { %v951_v31 = vpop.permute.xlu1 %950 }
 0x8a6   : > { %1361 = vmatpush3.msra.mxu1 %v951_v31  ;;  %1495 = vpow2.f32 %v1296_v30 }
 0x8a7   : > { %1365 = vmatprep.subr.mxu1 %v1726_v6 }
 0x8a9   : > { %v1035_v36 = vpop.permute.xlu1 %1034 }
 0x8b3   : > { %v1496_v32 = vpop.eup %1495 }
 0x8b4   : > { %v947_v33 = vadd.f32 1.0, %v1496_v32 }
 0x8b6   : > { %1497 = vrcp.f32 %v947_v33 }
 0x8c3   : > { %v1498_v35 = vpop.eup %1497 }
 0x8c4   : > { %1363 = vmatmul.mubr.msk.f32.vlgmr.msra.gmra.mxu1 %vm955_vm4, %v1498_v35  ;;  %v1139_v37 = vsel %vm955_vm4, %v1498_v35, 0.0 }
 0x8c5   : > { %1366 = vmatpush3.msra.mxu1 %v1037_v34  ;;  %1369 = vmatprep.mubr.msk.f32.mxu1 %vm1727_vm0, %v1726_v6  ;;  %1141 = vst [vmem:[#allocation2 + $0x8] sm:$0xff] %v1139_v37  ;;  %1143 = vst [vmem:[%s1944_s23 + $0x8] sm:$0xff] %v1139_v37 }
 0x8c6   : > { %1367 = vmatprep.subr.mxu1 %v1726_v6 }
 0x8c7   : > { %1368 = vmatpush3.msra.mxu1 %v1035_v36 }
 0x8c8   : > { %1370 = vmatmul.mubr.msk.f32.vlgmr.msra.gmra.mxu1 %vm557_vm1, %v1033_v38 }
 0x984   : > { %v1027_v39 = vpop.f32.mrf.mxu1 }
 0x985   : > { %v1031_v41 = vadd.f32 %v1027_v39, %v1961_v43 }
 0x986   : > { %v1364_v40 = vpop.f32.mrf.mxu1 }
 0x988   : > { %v1108_v42 = vpop.f32.mrf.mxu1 }
 0x989   : > { %v1112_v44 = vadd.f32 %v1108_v42, %v1031_v41 }
 0x98a   : > { %v1371_v45 = vpop.f32.mrf.mxu1 }
 0x98b   : > { %v1114_v46 = vsel %vm1113_vm5, %v1112_v44, -inf }
 0x98c   : > { %1115 = vmax.xlane.f32.xlu1 %v1114_v46 }
 0xa15   : > { %v1116_v48 = vpop.xlane.xlu1 %1115 }
 0xa16   : > { %v1117_v49 = vsub.f32 %v1112_v44, %v1116_v48 }
 0xa18   : > { %v1118_v50 = vmul.f32 1.442695, %v1117_v49 }
 0xa1a   : > { %1499 = vpow2.f32 %v1118_v50 }
 0xa1b   : > { %1501 = vpow2.f32 %v1289_v56 }
 0xa1c   : > { %1503 = vpow2.f32 %v1295_v57 }
 0xa27   : > { %v1500_v6 = vpop.eup %1499 }
 0xa28   : > { %v1120_v51 = vsel %vm1113_vm5, %v1500_v6, 0.0  ;;  %v1502_v58 = vpop.eup %1501 }
 0xa29   : > { %1121 = vadd.xlane.f32.xlu0 %v1120_v51  ;;  %v1504_v59 = vpop.eup %1503  ;;  %v739_v60 = vadd.f32 1.0, %v1502_v58 }
 0xa2a   : > { %v937_v62 = vadd.f32 1.0, %v1504_v59 }
 0xab2   : > { %v1122_v63 = vpop.xlane.xlu0 %1121 }
 0xab3   : > { %1505 = vrcp.f32 %v1122_v63 }
 0xab4   : > { %1507 = vrcp.f32 %v739_v60 }
 0xab5   : > { %1509 = vrcp.f32 %v937_v62 }
 0xac0   : > { %v1506_v0 = vpop.eup %1505 }
 0xac1   : > { %v1124_v1 = vmul.f32 %v1506_v0, %v1500_v6  ;;  %v1508_v2 = vpop.eup %1507 }
 0xac2   : > { %v1510_v3 = vpop.eup %1509 }
 0xac3   : > { %v1125_v43 = vsel %vm1113_vm5, %v1124_v1, %v1508_v2 }
 0xac4   : > { %v1126_v4 = vsel %vm655_vm3, %v1125_v43, %v1510_v3 }
 0xac5   : > { %v1128_v5 = vsel %vm1127_vm6, %v1126_v4, %v1964_v47 }
 0xac6   : > { %v1130_v7 = vsel %vm1129_vm7, %v1128_v5, %v1964_v47 }
 0xac7   : > { %v1132_v8 = vsel %vm1131_vm8, %v1130_v7, %v1979_v61 }
 0xac8   : > { %v1134_v10 = vsel %vm1133_vm9, %v1132_v8, %v1990_v9 }
 0xac9   : > { %v1136_v11 = vsel %vm1135_vm10, %v1134_v10, %v2003_v21 }
 0xaca   : > { %v1138_v47 = vsel %vm1137_vm11, %v1136_v11, 0.0 }
 0xacb   : > { %1140 = vst [vmem:[#allocation2] sm:$0xff] %v1138_v47  ;;  %1142 = vst [vmem:[%s1944_s23] sm:$0xff] %v1138_v47 }
 0xacc   : > { %1656 = shalt.err (!%p1653_p13)
}
 0xacd   : > { %s1657_s23 = scalar_lea.hbm %s2040_s15, 256  ;;  %s1661_s8 = scalar_lea.hbm %s2088_s5, 1536 }
 0xace   : > { %p1658_p1 = scmp.ne.s32.totalorder %s2040_s15, %s1657_s23  ;;  %p1662_p6 = scmp.lt.s32.totalorder %s2040_s15, %s2088_s5 }
 0xacf   : > { %p1663_p5 = scmp.lt.s32.totalorder %s1661_s8, %s1657_s23 }
 0xad0   : > { %p1659_p3 = pnand %p1658_p1, %p2107_p10 }
 0xad1   : > { %p1664_p8 = por %p1663_p5, %p1662_p6 }
 0xad2   : > { %p1660_p4 = pneg %p1659_p3 }
 0xad4   : > { %p1665_p7 = pnand %p1664_p8, %p1660_p4 }
 0xad6   : > { %1668 = shalt.err (!%p1665_p7)
}
 0xad7   : > { %1390 = dma.vmem_to_hbm [thread:$0]  (%p2107_p10), %s2042_s27, 256, %s2040_s15, %s1145_s24  }
 0xad8 PF: > { %p1422_p0 = scmp.ge.s32.totalorder %s1715_s21, 2  ;;  %s1171_s25 = sand.u32 1, %s1703_s18  }
 0xad9   : > { %p2108_p12 = scmp.ne.s32.totalorder %s2098_s14, 0  ;;  %s1172_s11 = scalar_lea.sflag [#allocation5], %s1171_s25 }
 0xadb   : > { %p1410_p2 = pnand %p1422_p0, %p2108_p12 }
 0xadd   : > { %p1411_p9 = pneg %p1410_p2 }
 0xadf   : > { %1698 = dma.done.wait (%p1411_p9), %s1172_s11, 256  }
 0xae0   : > { %1700 = vsyncadd (%p1411_p9), %s1172_s11, 4294967040  ;;  %p20_p11 = scmp.ge.s32.totalorder %s1862_s7, 8   ;;  %s2109_s18 = smov %s1707_s19 }
 0xae1   : > { %s2110_s19 = smov %s1711_s20  ;;  %s2111_s20 = smov %s1873_s10 }
 0xae2   : > { %s2112_s21 = smov %s1862_s7  ;;  %22 = sbr.rel (!%p20_p11) target bundleno = 7 (0x7), region = 105 }
 0xae7   :  { %1177 = vsyncpa [#allocation4], 1 }
 0xae8   :  { %1179 = vsyncpa [#allocation4 + $0x1], 1 }
 0xae9   :  { %1180 = vsyncpa [#allocation7], 1 }
 0xaea   :  { %1181 = vsyncpa [#allocation10], 1 }
 0xaeb   :  { %1182 = vsyncpa [#allocation5], 1 }
 0xaec   :  { %1184 = vsyncpa [#allocation5 + $0x1], 1 }

</bundles_post_ra>
